<compile_context>
chip_gen: v5e
topology: v5e:2x2
jax: 0.10.0
libtpu: 0.0.40
codegen_flags: <defaults>
</compile_context>

<pallas_src>
import jax
import jax.numpy as jnp
from jax.experimental import pallas as pl
from jax.experimental.pallas import tpu as pltpu


# ---------------------------------------------------------------------------
# Kernel A: table VMEM-resident, gather R rows per grid step, one dense store.
# ---------------------------------------------------------------------------
def _gather_resident_kernel(idx_ref, w_ref, o_ref):
    # idx_ref: (B_pad,) int32 in SMEM (scalar prefetch)
    # w_ref:   (L, D) full embedding table in VMEM (constant block index ->
    #          streamed from HBM once, reused on every grid step)
    # o_ref:   (R, D) output block for this grid step
    i = pl.program_id(0)
    r_rows = o_ref.shape[0]                       # static
    base = i * r_rows
    rows = []
    for r in range(r_rows):                       # small static R -> unrolled
        row = idx_ref[base + r]                   # scalar read from SMEM
        rows.append(w_ref[pl.ds(row, 1), :])      # (1, D) dynamic-row VMEM slice
    # Single lane/sublane-dense (R, D) store instead of R masked row stores.
    o_ref[...] = jnp.concatenate(rows, axis=0)


# ---------------------------------------------------------------------------
# Kernel B (fallback for very large tables): BlockSpec-driven HBM row gather.
# Row selection happens in the index_map; the body is just the copy.
# ---------------------------------------------------------------------------
def _gather_row_kernel(idx_ref, w_row_ref, o_row_ref):
    del idx_ref
    o_row_ref[...] = w_row_ref[...]


def positional_encoding(t, emb_weight, *, rows_per_step=None, force_pallas=False,
                        vmem_budget_bytes=20 * 1024 * 1024):
    """Pallas equivalent of PositionalEncoding.forward(t).

    Args:
      t: int array of shape [B] with values in [0, max_seq_len).
      emb_weight: float array of shape [max_seq_len, d_model].
      rows_per_step: rows gathered per grid step (default: adaptive, <=32).
      force_pallas: run the Pallas kernel even for tiny workloads.
      vmem_budget_bytes: budget used to decide VMEM-resident vs HBM-gather path.

    Returns:
      Array of shape [B, d_model], dtype of emb_weight.
    """
    t = jnp.asarray(t)
    emb_weight = jnp.asarray(emb_weight)
    L, D = emb_weight.shape
    B = t.shape[0]
    itemsize = jnp.dtype(emb_weight.dtype).itemsize

    # Bounds safety: PyTorch raises IndexError on OOB indices; clamp instead.
    t = jnp.clip(t.astype(jnp.int32), 0, L - 1)

    # Tiny workloads: pallas_call fixed launch cost dwarfs a ~KiB gather.
    if not force_pallas and B * D * itemsize < 16 * 1024:
        return jnp.take(emb_weight, t, axis=0)

    if rows_per_step is None:
        # Gather up to 32 rows per grid step (multiple of 8 sublanes; also a
        # multiple of the bf16/int8 packed-tile heights), so per-step overhead
        # is amortized and small batches collapse into a single grid step.
        rows_per_step = min(32, -(-B // 8) * 8)
    R = int(rows_per_step)

    n_steps = pl.cdiv(B, R)
    B_pad = n_steps * R
    if B_pad != B:
        t_pad = jnp.concatenate([t, jnp.zeros((B_pad - B,), jnp.int32)])
    else:
        t_pad = t

    table_bytes = L * D * itemsize
    out_block_bytes = R * D * itemsize
    # Conservative: assume table + output block may each be double-buffered.
    vmem_needed = 2 * table_bytes + 2 * out_block_bytes

    cost = pl.CostEstimate(
        flops=0,
        transcendentals=0,
        bytes_accessed=table_bytes + 2 * B_pad * D * itemsize,
    )
    cparams = pltpu.CompilerParams(
        dimension_semantics=("parallel",),      # independent rows -> 2 TCs on v7x
        vmem_limit_bytes=32 * 1024 * 1024,
    )

    if vmem_needed <= vmem_budget_bytes:
        # --- Primary path: whole table VMEM-resident, R rows per grid step. ---
        grid_spec = pltpu.PrefetchScalarGridSpec(
            num_scalar_prefetch=1,              # t lands in SMEM
            grid=(n_steps,),
            in_specs=[
                # Constant block index -> table streamed into VMEM once, reused.
                pl.BlockSpec((L, D), lambda i, idx: (0, 0)),
            ],
            out_specs=pl.BlockSpec((R, D), lambda i, idx: (i, 0)),
        )
        out = pl.pallas_call(
            _gather_resident_kernel,
            out_shape=jax.ShapeDtypeStruct((B_pad, D), emb_weight.dtype),
            grid_spec=grid_spec,
            compiler_params=cparams,
            cost_estimate=cost,
        )(t_pad, emb_weight)
    else:
        # --- Fallback: per-row HBM gather driven by the prefetched indices. ---
        # Deeper input buffering keeps several tiny row DMAs in flight
        # (zero-compute body, purely latency-bound).
        grid_spec = pltpu.PrefetchScalarGridSpec(
            num_scalar_prefetch=1,
            grid=(B_pad,),
            in_specs=[
                pl.BlockSpec((1, D), lambda i, idx: (idx[i], 0),
                             pipeline_mode=pl.Buffered(4)),
            ],
            out_specs=pl.BlockSpec((1, D), lambda i, idx: (i, 0)),
        )
        out = pl.pallas_call(
            _gather_row_kernel,
            out_shape=jax.ShapeDtypeStruct((B_pad, D), emb_weight.dtype),
            grid_spec=grid_spec,
            compiler_params=cparams,
            cost_estimate=cost,
        )(t_pad, emb_weight)

    return out[:B] if B_pad != B else out


if __name__ == "__main__":
    max_seq_len = 64
    d_model = 128
    batch = 16

    key = jax.random.PRNGKey(0)
    k_w, k_t = jax.random.split(key)

    # Deterministic xavier_normal_ init: std = sqrt(2 / (fan_in + fan_out)).
    std = (2.0 / (max_seq_len + d_model)) ** 0.5
    emb_weight = (std * jax.random.normal(k_w, (max_seq_len, d_model))).astype(jnp.float32)

    # Timestep indices (like diffusion timesteps), shape [batch].
    t = jax.random.randint(k_t, (batch,), 0, max_seq_len, dtype=jnp.int32)

    ref = jnp.take(emb_weight, t, axis=0)

    # 1) Primary path (table VMEM-resident).  Demo shapes are below the tiny-
    #    workload threshold, so force the Pallas path to exercise the kernel.
    out = jax.block_until_ready(positional_encoding(t, emb_weight, force_pallas=True))
    assert out.shape == (batch, d_model)
    assert out.dtype == emb_weight.dtype
    assert bool(jnp.allclose(out, ref)), "mismatch vs reference gather (resident path)"

    # 2) Batch that is not a multiple of rows_per_step (padding path).
    t_odd = t[:13]
    out_odd = jax.block_until_ready(
        positional_encoding(t_odd, emb_weight, force_pallas=True))
    assert bool(jnp.allclose(out_odd, jnp.take(emb_weight, t_odd, axis=0))), \
        "mismatch vs reference gather (padded batch)"

    # 3) Fallback path (per-row HBM gather), forced by zeroing the VMEM budget.
    out_fb = jax.block_until_ready(
        positional_encoding(t, emb_weight, force_pallas=True, vmem_budget_bytes=0))
    assert bool(jnp.allclose(out_fb, ref)), "mismatch vs reference gather (HBM path)"

    print("KERNEL_OK")
</pallas_src>

<mosaic_0001>
module attributes {stable_mosaic.version = 11 : i64} {
  func.func @_gather_resident_kernel(%arg0: i32, %arg1: memref<16xi32, #tpu.memory_space<smem>>, %arg2: memref<64x128xf32, #tpu.memory_space<vmem>>, %arg3: memref<16x128xf32, #tpu.memory_space<vmem>>) attributes {dimension_semantics = [#tpu.dimension_semantics<parallel>], iteration_bounds = array<i64: 1>, scalar_prefetch = 1 : i64, scratch_operands = 0 : i64, tpu.core_type = #tpu.core_type<tc>, window_params = [{pipeline_mode = #tpu.pipeline_mode<synchronous>, transform_indices = @transform_0, window_bounds = array<i64: 64, 128>}, {transform_indices = @transform_1, window_bounds = array<i64: 16, 128>}]} {
    %c16_i32 = arith.constant 16 : i32
    %0 = arith.muli %arg0, %c16_i32 : i32
    %c0_i32 = arith.constant 0 : i32
    %1 = arith.addi %0, %c0_i32 : i32
    %2 = arith.index_cast %1 : i32 to index
    %3 = memref.load %arg1[%2] : memref<16xi32, #tpu.memory_space<smem>>
    %4 = arith.index_cast %3 : i32 to index
    %c0 = arith.constant 0 : index
    %5 = vector.load %arg2[%4, %c0] : memref<64x128xf32, #tpu.memory_space<vmem>>, vector<1x128xf32>
    %c1_i32 = arith.constant 1 : i32
    %6 = arith.addi %0, %c1_i32 : i32
    %7 = arith.index_cast %6 : i32 to index
    %8 = memref.load %arg1[%7] : memref<16xi32, #tpu.memory_space<smem>>
    %9 = arith.index_cast %8 : i32 to index
    %c0_0 = arith.constant 0 : index
    %10 = vector.load %arg2[%9, %c0_0] : memref<64x128xf32, #tpu.memory_space<vmem>>, vector<1x128xf32>
    %c2_i32 = arith.constant 2 : i32
    %11 = arith.addi %0, %c2_i32 : i32
    %12 = arith.index_cast %11 : i32 to index
    %13 = memref.load %arg1[%12] : memref<16xi32, #tpu.memory_space<smem>>
    %14 = arith.index_cast %13 : i32 to index
    %c0_1 = arith.constant 0 : index
    %15 = vector.load %arg2[%14, %c0_1] : memref<64x128xf32, #tpu.memory_space<vmem>>, vector<1x128xf32>
    %c3_i32 = arith.constant 3 : i32
    %16 = arith.addi %0, %c3_i32 : i32
    %17 = arith.index_cast %16 : i32 to index
    %18 = memref.load %arg1[%17] : memref<16xi32, #tpu.memory_space<smem>>
    %19 = arith.index_cast %18 : i32 to index
    %c0_2 = arith.constant 0 : index
    %20 = vector.load %arg2[%19, %c0_2] : memref<64x128xf32, #tpu.memory_space<vmem>>, vector<1x128xf32>
    %c4_i32 = arith.constant 4 : i32
    %21 = arith.addi %0, %c4_i32 : i32
    %22 = arith.index_cast %21 : i32 to index
    %23 = memref.load %arg1[%22] : memref<16xi32, #tpu.memory_space<smem>>
    %24 = arith.index_cast %23 : i32 to index
    %c0_3 = arith.constant 0 : index
    %25 = vector.load %arg2[%24, %c0_3] : memref<64x128xf32, #tpu.memory_space<vmem>>, vector<1x128xf32>
    %c5_i32 = arith.constant 5 : i32
    %26 = arith.addi %0, %c5_i32 : i32
    %27 = arith.index_cast %26 : i32 to index
    %28 = memref.load %arg1[%27] : memref<16xi32, #tpu.memory_space<smem>>
    %29 = arith.index_cast %28 : i32 to index
    %c0_4 = arith.constant 0 : index
    %30 = vector.load %arg2[%29, %c0_4] : memref<64x128xf32, #tpu.memory_space<vmem>>, vector<1x128xf32>
    %c6_i32 = arith.constant 6 : i32
    %31 = arith.addi %0, %c6_i32 : i32
    %32 = arith.index_cast %31 : i32 to index
    %33 = memref.load %arg1[%32] : memref<16xi32, #tpu.memory_space<smem>>
    %34 = arith.index_cast %33 : i32 to index
    %c0_5 = arith.constant 0 : index
    %35 = vector.load %arg2[%34, %c0_5] : memref<64x128xf32, #tpu.memory_space<vmem>>, vector<1x128xf32>
    %c7_i32 = arith.constant 7 : i32
    %36 = arith.addi %0, %c7_i32 : i32
    %37 = arith.index_cast %36 : i32 to index
    %38 = memref.load %arg1[%37] : memref<16xi32, #tpu.memory_space<smem>>
    %39 = arith.index_cast %38 : i32 to index
    %c0_6 = arith.constant 0 : index
    %40 = vector.load %arg2[%39, %c0_6] : memref<64x128xf32, #tpu.memory_space<vmem>>, vector<1x128xf32>
    %c8_i32 = arith.constant 8 : i32
    %41 = arith.addi %0, %c8_i32 : i32
    %42 = arith.index_cast %41 : i32 to index
    %43 = memref.load %arg1[%42] : memref<16xi32, #tpu.memory_space<smem>>
    %44 = arith.index_cast %43 : i32 to index
    %c0_7 = arith.constant 0 : index
    %45 = vector.load %arg2[%44, %c0_7] : memref<64x128xf32, #tpu.memory_space<vmem>>, vector<1x128xf32>
    %c9_i32 = arith.constant 9 : i32
    %46 = arith.addi %0, %c9_i32 : i32
    %47 = arith.index_cast %46 : i32 to index
    %48 = memref.load %arg1[%47] : memref<16xi32, #tpu.memory_space<smem>>
    %49 = arith.index_cast %48 : i32 to index
    %c0_8 = arith.constant 0 : index
    %50 = vector.load %arg2[%49, %c0_8] : memref<64x128xf32, #tpu.memory_space<vmem>>, vector<1x128xf32>
    %c10_i32 = arith.constant 10 : i32
    %51 = arith.addi %0, %c10_i32 : i32
    %52 = arith.index_cast %51 : i32 to index
    %53 = memref.load %arg1[%52] : memref<16xi32, #tpu.memory_space<smem>>
    %54 = arith.index_cast %53 : i32 to index
    %c0_9 = arith.constant 0 : index
    %55 = vector.load %arg2[%54, %c0_9] : memref<64x128xf32, #tpu.memory_space<vmem>>, vector<1x128xf32>
    %c11_i32 = arith.constant 11 : i32
    %56 = arith.addi %0, %c11_i32 : i32
    %57 = arith.index_cast %56 : i32 to index
    %58 = memref.load %arg1[%57] : memref<16xi32, #tpu.memory_space<smem>>
    %59 = arith.index_cast %58 : i32 to index
    %c0_10 = arith.constant 0 : index
    %60 = vector.load %arg2[%59, %c0_10] : memref<64x128xf32, #tpu.memory_space<vmem>>, vector<1x128xf32>
    %c12_i32 = arith.constant 12 : i32
    %61 = arith.addi %0, %c12_i32 : i32
    %62 = arith.index_cast %61 : i32 to index
    %63 = memref.load %arg1[%62] : memref<16xi32, #tpu.memory_space<smem>>
    %64 = arith.index_cast %63 : i32 to index
    %c0_11 = arith.constant 0 : index
    %65 = vector.load %arg2[%64, %c0_11] : memref<64x128xf32, #tpu.memory_space<vmem>>, vector<1x128xf32>
    %c13_i32 = arith.constant 13 : i32
    %66 = arith.addi %0, %c13_i32 : i32
    %67 = arith.index_cast %66 : i32 to index
    %68 = memref.load %arg1[%67] : memref<16xi32, #tpu.memory_space<smem>>
    %69 = arith.index_cast %68 : i32 to index
    %c0_12 = arith.constant 0 : index
    %70 = vector.load %arg2[%69, %c0_12] : memref<64x128xf32, #tpu.memory_space<vmem>>, vector<1x128xf32>
    %c14_i32 = arith.constant 14 : i32
    %71 = arith.addi %0, %c14_i32 : i32
    %72 = arith.index_cast %71 : i32 to index
    %73 = memref.load %arg1[%72] : memref<16xi32, #tpu.memory_space<smem>>
    %74 = arith.index_cast %73 : i32 to index
    %c0_13 = arith.constant 0 : index
    %75 = vector.load %arg2[%74, %c0_13] : memref<64x128xf32, #tpu.memory_space<vmem>>, vector<1x128xf32>
    %c15_i32 = arith.constant 15 : i32
    %76 = arith.addi %0, %c15_i32 : i32
    %77 = arith.index_cast %76 : i32 to index
    %78 = memref.load %arg1[%77] : memref<16xi32, #tpu.memory_space<smem>>
    %79 = arith.index_cast %78 : i32 to index
    %c0_14 = arith.constant 0 : index
    %80 = vector.load %arg2[%79, %c0_14] : memref<64x128xf32, #tpu.memory_space<vmem>>, vector<1x128xf32>
    %81 = tpu.concatenate %5, %10, %15, %20, %25, %30, %35, %40, %45, %50, %55, %60, %65, %70, %75, %80 in 0 : vector<1x128xf32>, vector<1x128xf32>, vector<1x128xf32>, vector<1x128xf32>, vector<1x128xf32>, vector<1x128xf32>, vector<1x128xf32>, vector<1x128xf32>, vector<1x128xf32>, vector<1x128xf32>, vector<1x128xf32>, vector<1x128xf32>, vector<1x128xf32>, vector<1x128xf32>, vector<1x128xf32>, vector<1x128xf32> -> vector<16x128xf32>
    %c0_15 = arith.constant 0 : index
    %c0_16 = arith.constant 0 : index
    %82 = vector.load %arg3[%c0_15, %c0_16] : memref<16x128xf32, #tpu.memory_space<vmem>>, vector<16x128xf32>
    tpu.vector_store %arg3[%c0_15, %c0_16], %81 {strides = array<i32>} : memref<16x128xf32, #tpu.memory_space<vmem>>, vector<16x128xf32>,
    return
  }
  func.func @transform_0(%arg0: i32, %arg1: memref<16xi32, #tpu.memory_space<smem>>) -> (i32, i32) {
    %c0_i32 = arith.constant 0 : i32
    %c0_i32_0 = arith.constant 0 : i32
    %c0_i32_1 = arith.constant 0 : i32
    return %c0_i32, %c0_i32_0 : i32, i32
  }
  func.func @transform_1(%arg0: i32, %arg1: memref<16xi32, #tpu.memory_space<smem>>) -> (i32, i32) {
    %c0_i32 = arith.constant 0 : i32
    %c0_i32_0 = arith.constant 0 : i32
    return %arg0, %c0_i32 : i32, i32
  }
}

</mosaic_0001>

<bundles_post_ra>
// kernel: tpu_custom_call.1
= control target key start
LH: loop header
LB: loop body
LE: loop exit
PB: predicated region body
PF: predicated region fallthrough
CT: control target
= control target key end

     0   :  { %s284_s12 = smov [#allocation3]   ;;  %s357_s0 = inlined_call_operand.hbm [shape: s32[16], index: 0, kind: input, shape index: {}]   ;;  %s358_s1 = inlined_call_operand.hbm [shape: f32[64,128], index: 1, kind: input, shape index: {}]   ;;  %s359_s2 = inlined_call_operand.hbm [shape: f32[16,128], index: 2, kind: output, shape index: {}]  }
   0x1   :  { %s8_s11 = sshll.u32 %s357_s0, 4  ;;  %s9_s11 = int_to_ptr.hbm [resolvable:$true] %s8_s11 }
   0x2   :  { %11 = dma.hbm_to_smem %s9_s11, 16, %s284_s12, [#allocation2] }
   0x3   :  { %278 = dma.done.wait [#allocation2], 16 }
   0x4   :  { %279 = vsyncadd [#allocation2], 4294967280 }
   0x5   :  { %14 = sfence }
   0x6   :  { %15 = vsyncpa [#allocation5], 0 }
   0x7   :  { %16 = vsyncpa [#allocation6], 0  ;;  %s21_s15 = sshll.u32 %s358_s1, 4  ;;  %s285_s16 = smov [#allocation4]   ;;  %s22_s15 = int_to_ptr.hbm [resolvable:$true] %s21_s15 }
   0x8   :  { %s23_s17 = sshll.u32 %s285_s16, 4  ;;  %s286_s18 = smov 128   ;;  %s24_s17 = int_to_ptr.vmem [resolvable:$true] %s23_s17 }
   0x9   :  { %s287_s19 = smov 8  }
   0xa   :  { %29 = dma.hbm_to_vmem [thread:$0]  %s22_s15, 1024, %s24_s17, [#allocation5], %s286_s18, %s286_s18, %s287_s19  }
   0xb   :  { %280 = dma.done.wait [#allocation5], 1024  }
   0xc   :  { %281 = vsyncadd [#allocation5], 4294966272  ;;  %s35_s0 = sld [smem:[#allocation3]]  ;;  %vm140_vm0 = vcmask 1040384   ;;  %vm142_vm1 = vcmask 1041408   ;;  %vm144_vm2 = vcmask 1042432  }
   0xd   :  { %s198_s20 = sld [smem:[#allocation3 + $0x1]]  ;;  %vm146_vm3 = vcmask 1043456   ;;  %vm148_vm4 = vcmask 1044480   ;;  %vm150_vm5 = vcmask 1045504   ;;  %vm152_vm6 = vcmask 1046528  }
   0xe   :  { %s199_s21 = sld [smem:[#allocation3 + $0x2]] }
   0xf   :  { %s200_s22 = sld [smem:[#allocation3 + $0x3]] }
  0x10   :  { %s201_s23 = sld [smem:[#allocation3 + $0x4]] }
  0x11   :  { %s313_s24 = sld [smem:[#allocation3 + $0x5]] }
  0x12   :  { %s315_s1 = sld [smem:[#allocation3 + $0x6]]  ;;  %s36_s25 = scalar_lea.vmem [#allocation4], %s35_s0 }
  0x13   :  { %v37_v0 = vld [vmem:[%s36_s25] sm:$0x1]  ;;  %s317_s26 = sld [smem:[#allocation3 + $0x7]]  ;;  %s40_s27 = scalar_lea.vmem [#allocation4], %s198_s20 }
  0x14   :  { %v41_v1 = vld [vmem:[%s40_s27] sm:$0x1]  ;;  %s319_s28 = sld [smem:[#allocation3 + $0x8]]  ;;  %s44_s29 = scalar_lea.vmem [#allocation4], %s199_s21 }
  0x15   :  { %v45_v2 = vld [vmem:[%s44_s29] sm:$0x1]  ;;  %v99_v3 = vrot.slane %v41_v1, 7  ;;  %s321_s30 = sld [smem:[#allocation3 + $0x9]]  ;;  %s48_s3 = scalar_lea.vmem [#allocation4], %s200_s22 }
  0x16   :  { %v49_v4 = vld [vmem:[%s48_s3] sm:$0x1]  ;;  %v102_v5 = vrot.slane %v45_v2, 6  ;;  %s323_s4 = sld [smem:[#allocation3 + $0xa]]  ;;  %s52_s5 = scalar_lea.vmem [#allocation4], %s201_s23 }
  0x17   :  { %v53_v6 = vld [vmem:[%s52_s5] sm:$0x1]  ;;  %v105_v7 = vrot.slane %v49_v4, 5  ;;  %v141_v8 = vsel %vm140_vm0, %v37_v0, %v99_v3  ;;  %s326_s6 = sld [smem:[#allocation3 + $0xb]]  ;;  %s56_s7 = scalar_lea.vmem [#allocation4], %s313_s24 }
  0x18   :  { %v57_v9 = vld [vmem:[%s56_s7] sm:$0x1]  ;;  %v108_v10 = vrot.slane %v53_v6, 4  ;;  %v143_v11 = vsel %vm142_vm1, %v141_v8, %v102_v5  ;;  %s209_s8 = sld [smem:[#allocation3 + $0xc]]  ;;  %s60_s9 = scalar_lea.vmem [#allocation4], %s315_s1 }
  0x19   :  { %v61_v12 = vld [vmem:[%s60_s9] sm:$0x1]  ;;  %v111_v13 = vrot.slane %v57_v9, 3  ;;  %v145_v14 = vsel %vm144_vm2, %v143_v11, %v105_v7  ;;  %s210_s10 = sld [smem:[#allocation3 + $0xd]]  ;;  %s64_s11 = scalar_lea.vmem [#allocation4], %s317_s26 }
  0x1a   :  { %v65_v15 = vld [vmem:[%s64_s11] sm:$0x1]  ;;  %v114_v16 = vrot.slane %v61_v12, 2  ;;  %v147_v17 = vsel %vm146_vm3, %v145_v14, %v108_v10  ;;  %s211_s12 = sld [smem:[#allocation3 + $0xe]]  ;;  %s68_s14 = scalar_lea.vmem [#allocation4], %s319_s28 }
  0x1b   :  { %v117_v18 = vrot.slane %v65_v15, 1  ;;  %v149_v19 = vsel %vm148_vm4, %v147_v17, %v111_v13  ;;  %s335_s13 = sld [smem:[#allocation3 + $0xf]]  ;;  %v69_v21 = vld [vmem:[%s68_s14] sm:$0x1]  ;;  %s72_s15 = scalar_lea.vmem [#allocation4], %s321_s30 }
  0x1c   :  { %v151_v20 = vsel %vm150_vm5, %v149_v19, %v114_v16  ;;  %v73_v22 = vld [vmem:[%s72_s15] sm:$0x1]  ;;  %s76_s16 = scalar_lea.vmem [#allocation4], %s323_s4  ;;  %s288_s21 = smov [#allocation7]  }
  0x1d   :  { %v153_v23 = vsel %vm152_vm6, %v151_v20, %v117_v18  ;;  %v77_v24 = vld [vmem:[%s76_s16] sm:$0x1]  ;;  %v120_v25 = vrot.slane %v73_v22, 7  ;;  %s80_s17 = scalar_lea.vmem [#allocation4], %s326_s6  ;;  %s167_s22 = sshll.u32 %s288_s21, 4  ;;  %s168_s22 = int_to_ptr.vmem [resolvable:$true] %s167_s22 }
  0x1e   :  { %161 = vst [vmem:[#allocation7] sm:$0xff] %v153_v23  ;;  %v81_v26 = vld [vmem:[%s80_s17] sm:$0x1]  ;;  %v123_v27 = vrot.slane %v77_v24, 6  ;;  %s84_s0 = scalar_lea.vmem [#allocation4], %s209_s8  ;;  %s169_s25 = sshll.u32 %s359_s2, 4  ;;  %s170_s25 = int_to_ptr.hbm [resolvable:$true] %s169_s25 }
  0x1f   :  { %v85_v28 = vld [vmem:[%s84_s0] sm:$0x1]  ;;  %v126_v29 = vrot.slane %v81_v26, 5  ;;  %v154_v30 = vsel %vm140_vm0, %v69_v21, %v120_v25  ;;  %s88_s20 = scalar_lea.vmem [#allocation4], %s210_s10 }
  0x20   :  { %v89_v31 = vld [vmem:[%s88_s20] sm:$0x1]  ;;  %v129_v32 = vrot.slane %v85_v28, 4  ;;  %v155_v33 = vsel %vm142_vm1, %v154_v30, %v123_v27  ;;  %s92_s23 = scalar_lea.vmem [#allocation4], %s211_s12 }
  0x21   :  { %v93_v34 = vld [vmem:[%s92_s23] sm:$0x1]  ;;  %v132_v35 = vrot.slane %v89_v31, 3  ;;  %v156_v36 = vsel %vm144_vm2, %v155_v33, %v126_v29  ;;  %s96_s26 = scalar_lea.vmem [#allocation4], %s335_s13 }
  0x22   :  { %v97_v37 = vld [vmem:[%s96_s26] sm:$0x1]  ;;  %v135_v38 = vrot.slane %v93_v34, 2  ;;  %v157_v39 = vsel %vm146_vm3, %v156_v36, %v129_v32 }
  0x23   :  { %v138_v40 = vrot.slane %v97_v37, 1  ;;  %v158_v41 = vsel %vm148_vm4, %v157_v39, %v132_v35 }
  0x24   :  { %v159_v42 = vsel %vm150_vm5, %v158_v41, %v135_v38 }
  0x25   :  { %v160_v43 = vsel %vm152_vm6, %v159_v42, %v138_v40 }
  0x26   :  { %162 = vst [vmem:[#allocation7 + $0x8] sm:$0xff] %v160_v43 }
  0x27   :  { %175 = dma.vmem_to_hbm [thread:$0]  %s168_s22, 256, %s170_s25, [#allocation6], %s286_s18, %s286_s18, %s287_s19  }
  0x28   :  { %282 = dma.done.wait [#allocation6], 256  }
  0x29   :  { %283 = vsyncadd [#allocation6], 4294967040 }
  0x2a   :  { %180 = vsyncpa [#allocation5], 1 }
  0x2b   :  { %181 = vsyncpa [#allocation6], 1 }

</bundles_post_ra>
